<compile_context>
chip_gen: v6e
topology: v6e:2x2x1
jax: 0.10.0
libtpu: 0.0.40
codegen_flags: <defaults>
</compile_context>

<pallas_src>
import jax
import jax.numpy as jnp
from jax import lax
from jax.experimental import pallas as pl
from jax.experimental.pallas import tpu as pltpu


def lstm_fc_kernel(gx_ref, w_hh_ref, w_fc_ref, b_fc_ref, out_ref, h_ref, c_ref):
    """One time-chunk of the LSTM recurrence (+ final FC on the last chunk).

    gx_ref:   (TT, B, 4H)  precomputed x@W_ih^T + b for this time chunk
    w_hh_ref: (H, 4H)      hidden->gates weights (transposed)
    w_fc_ref: (H, C)       final linear weights (transposed)
    b_fc_ref: (1, C)       final linear bias
    out_ref:  (B, C)       logits (written only on the last grid step)
    h_ref/c_ref: (B, H)    VMEM scratch carrying state across time chunks
    """
    H = h_ref.shape[1]
    TT = gx_ref.shape[0]
    t_blk = pl.program_id(0)

    @pl.when(t_blk == 0)
    def _():
        h_ref[...] = jnp.zeros_like(h_ref)
        c_ref[...] = jnp.zeros_like(c_ref)

    w_hh = w_hh_ref[...]  # hoist the weight load out of the recurrent loop

    def step(t, carry):
        h, c = carry
        # Only the recurrent matmul remains inside the serial chain.
        gates = gx_ref[t] + jnp.dot(h, w_hh,
                                    preferred_element_type=jnp.float32)  # (B, 4H)
        sg = jax.nn.sigmoid(gates)            # one EUP push over the whole vreg
        i = sg[:, 0 * H:1 * H]
        f = sg[:, 1 * H:2 * H]
        o = sg[:, 3 * H:4 * H]
        g = jnp.tanh(gates[:, 2 * H:3 * H])   # tanh on the pre-activation slice
        c_new = f * c + i * g
        h_new = o * jnp.tanh(c_new)
        return h_new, c_new

    # Carry h/c in registers; fully unroll (TT is small & static) for scheduling.
    h, c = lax.fori_loop(0, TT, step, (h_ref[...], c_ref[...]), unroll=True)

    # Persist state for the next time chunk.
    h_ref[...] = h
    c_ref[...] = c

    @pl.when(t_blk == pl.num_programs(0) - 1)
    def _():
        out_ref[...] = (jnp.dot(h, w_fc_ref[...],
                                preferred_element_type=jnp.float32)
                        + b_fc_ref[...])


def _pick_time_chunk(T, target=32):
    """Largest chunk <= target that evenly divides T."""
    tt = min(T, target)
    while T % tt:
        tt -= 1
    return tt


def lstm_model_forward(x, params, *, time_chunk=32):
    """x: (B, T, D) float32, batch_first like the PyTorch module."""
    B, T, D = x.shape
    w_ih = params["w_ih"].astype(jnp.float32)                 # (4H, D)
    w_hh = params["w_hh"].astype(jnp.float32)                 # (4H, H)
    b = (params["b_ih"] + params["b_hh"]).astype(jnp.float32)  # (4H,)
    w_fc = params["w_fc"].astype(jnp.float32)                 # (C, H)
    b_fc = params["b_fc"].astype(jnp.float32)                 # (C,)
    H = w_hh.shape[1]
    G = 4 * H
    C = w_fc.shape[0]

    # Hoisted input projection for ALL timesteps as a single matmul, with the
    # batch-first -> time-major transpose folded in (no separate transpose pass).
    gx = jnp.einsum('btd,gd->tbg', x.astype(jnp.float32), w_ih,
                    preferred_element_type=jnp.float32) + b[None, None, :]  # (T,B,4H)

    w_hh_t = w_hh.T          # (H, 4H)
    w_fc_t = w_fc.T          # (H, C)
    b_fc2 = b_fc[None, :]    # (1, C)

    tt = _pick_time_chunk(T, time_chunk)
    grid = (T // tt,)

    # TODO(synk): if batch grows, add a "parallel" batch grid axis so the
    # recurrence shards across v7x's two TensorCores.
    out = pl.pallas_call(
        lstm_fc_kernel,
        out_shape=jax.ShapeDtypeStruct((B, C), jnp.float32),
        grid_spec=pltpu.PrefetchScalarGridSpec(
            num_scalar_prefetch=0,
            grid=grid,
            in_specs=[
                pl.BlockSpec((tt, B, G), lambda i: (i, 0, 0)),  # gx time chunk
                pl.BlockSpec((H, G), lambda i: (0, 0)),         # w_hh^T
                pl.BlockSpec((H, C), lambda i: (0, 0)),         # w_fc^T
                pl.BlockSpec((1, C), lambda i: (0, 0)),         # b_fc
            ],
            out_specs=pl.BlockSpec((B, C), lambda i: (0, 0)),
            scratch_shapes=[
                pltpu.VMEM((B, H), jnp.float32),   # h state (persists over chunks)
                pltpu.VMEM((B, H), jnp.float32),   # c state
            ],
        ),
        compiler_params=pltpu.CompilerParams(
            dimension_semantics=("arbitrary",),    # serial recurrence over time
        ),
    )(gx, w_hh_t, w_fc_t, b_fc2)
    return out


def lstm_model_reference(x, params):
    """Pure-JAX reference with identical PyTorch LSTM semantics."""
    w_ih, w_hh = params["w_ih"], params["w_hh"]
    b_ih, b_hh = params["b_ih"], params["b_hh"]
    w_fc, b_fc = params["w_fc"], params["b_fc"]
    H = w_hh.shape[1]
    B, T, D = x.shape
    h = jnp.zeros((B, H), jnp.float32)
    c = jnp.zeros((B, H), jnp.float32)
    for t in range(T):
        gates = x[:, t, :] @ w_ih.T + b_ih + h @ w_hh.T + b_hh
        i = jax.nn.sigmoid(gates[:, 0 * H:1 * H])
        f = jax.nn.sigmoid(gates[:, 1 * H:2 * H])
        g = jnp.tanh(gates[:, 2 * H:3 * H])
        o = jax.nn.sigmoid(gates[:, 3 * H:4 * H])
        c = f * c + i * g
        h = o * jnp.tanh(c)
    return h @ w_fc.T + b_fc


def init_params(key, input_dim, hidden_dim=16, num_classes=21):
    """Deterministic init matching nn.LSTM / nn.Linear shapes (uniform +-1/sqrt(H))."""
    k = 1.0 / jnp.sqrt(jnp.float32(hidden_dim))
    keys = jax.random.split(key, 6)
    return {
        "w_ih": jax.random.uniform(keys[0], (4 * hidden_dim, input_dim),
                                   jnp.float32, -k, k),
        "w_hh": jax.random.uniform(keys[1], (4 * hidden_dim, hidden_dim),
                                   jnp.float32, -k, k),
        "b_ih": jax.random.uniform(keys[2], (4 * hidden_dim,), jnp.float32, -k, k),
        "b_hh": jax.random.uniform(keys[3], (4 * hidden_dim,), jnp.float32, -k, k),
        "w_fc": jax.random.uniform(keys[4], (num_classes, hidden_dim),
                                   jnp.float32, -k, k),
        "b_fc": jax.random.uniform(keys[5], (num_classes,), jnp.float32, -k, k),
    }


if __name__ == "__main__":
    B, T, D = 2, 8, 4          # batch, seq_len, input_dim
    H, C = 16, 21              # hidden_dim (default), num_classes (default)

    key = jax.random.PRNGKey(0)
    kx, kp = jax.random.split(key)
    x = jax.random.normal(kx, (B, T, D), jnp.float32)
    params = init_params(kp, input_dim=D, hidden_dim=H, num_classes=C)

    out = lstm_model_forward(x, params)
    out = jax.block_until_ready(out)

    ref = lstm_model_reference(x, params)
    assert out.shape == (B, C), out.shape
    assert jnp.allclose(out, ref, atol=1e-4, rtol=1e-4), "mismatch vs reference"

    print("KERNEL_OK")
</pallas_src>

<mosaic_0001>
module attributes {stable_mosaic.version = 11 : i64} {
  func.func @lstm_fc_kernel(%arg0: i32, %arg1: memref<8x2x64xf32, #tpu.memory_space<vmem>>, %arg2: memref<16x64xf32, #tpu.memory_space<vmem>>, %arg3: memref<16x21xf32, #tpu.memory_space<vmem>>, %arg4: memref<1x21xf32, #tpu.memory_space<vmem>>, %arg5: memref<2x21xf32, #tpu.memory_space<vmem>>, %arg6: memref<2x16xf32, #tpu.memory_space<vmem>>, %arg7: memref<2x16xf32, #tpu.memory_space<vmem>>) attributes {dimension_semantics = [#tpu.dimension_semantics<arbitrary>], iteration_bounds = array<i64: 1>, scalar_prefetch = 0 : i64, scratch_operands = 2 : i64, tpu.core_type = #tpu.core_type<tc>, window_params = [{transform_indices = @transform_0, window_bounds = array<i64: 8, 2, 64>}, {pipeline_mode = #tpu.pipeline_mode<synchronous>, transform_indices = @transform_1, window_bounds = array<i64: 16, 64>}, {pipeline_mode = #tpu.pipeline_mode<synchronous>, transform_indices = @transform_2, window_bounds = array<i64: 16, 21>}, {pipeline_mode = #tpu.pipeline_mode<synchronous>, transform_indices = @transform_3, window_bounds = array<i64: 1, 21>}, {pipeline_mode = #tpu.pipeline_mode<synchronous>, transform_indices = @transform_4, window_bounds = array<i64: 2, 21>}]} {
    %c0_i32 = arith.constant 0 : i32
    %0 = arith.cmpi eq, %arg0, %c0_i32 : i32
    %1 = arith.extui %0 : i1 to i32
    %c0_i32_0 = arith.constant 0 : i32
    %2 = arith.cmpi ne, %1, %c0_i32_0 : i32
    scf.if %2 {
      %cst_44 = arith.constant 0.000000e+00 : f32
      %171 = vector.broadcast %cst_44 : f32 to vector<2x16xf32>
      %c0_45 = arith.constant 0 : index
      %c0_46 = arith.constant 0 : index
      %172 = vector.load %arg6[%c0_45, %c0_46] : memref<2x16xf32, #tpu.memory_space<vmem>>, vector<2x16xf32>
      tpu.vector_store %arg6[%c0_45, %c0_46], %171 {strides = array<i32>} : memref<2x16xf32, #tpu.memory_space<vmem>>, vector<2x16xf32>,
      %cst_47 = arith.constant 0.000000e+00 : f32
      %173 = vector.broadcast %cst_47 : f32 to vector<2x16xf32>
      %c0_48 = arith.constant 0 : index
      %c0_49 = arith.constant 0 : index
      %174 = vector.load %arg7[%c0_48, %c0_49] : memref<2x16xf32, #tpu.memory_space<vmem>>, vector<2x16xf32>
      tpu.vector_store %arg7[%c0_48, %c0_49], %173 {strides = array<i32>} : memref<2x16xf32, #tpu.memory_space<vmem>>, vector<2x16xf32>,
    } else {
    }
    %c0 = arith.constant 0 : index
    %c0_1 = arith.constant 0 : index
    %3 = vector.load %arg2[%c0, %c0_1] : memref<16x64xf32, #tpu.memory_space<vmem>>, vector<16x64xf32>
    %c0_2 = arith.constant 0 : index
    %c0_3 = arith.constant 0 : index
    %4 = vector.load %arg6[%c0_2, %c0_3] : memref<2x16xf32, #tpu.memory_space<vmem>>, vector<2x16xf32>
    %c0_4 = arith.constant 0 : index
    %c0_5 = arith.constant 0 : index
    %5 = vector.load %arg7[%c0_4, %c0_5] : memref<2x16xf32, #tpu.memory_space<vmem>>, vector<2x16xf32>
    %c0_i32_6 = arith.constant 0 : i32
    %6 = arith.index_cast %c0_i32_6 : i32 to index
    %c0_7 = arith.constant 0 : index
    %c0_8 = arith.constant 0 : index
    %7 = vector.load %arg1[%6, %c0_7, %c0_8] : memref<8x2x64xf32, #tpu.memory_space<vmem>>, vector<1x2x64xf32>
    %8 = vector.shape_cast %7 : vector<1x2x64xf32> to vector<2x64xf32>
    %cst = arith.constant dense<0.000000e+00> : vector<2x64xf32>
    %9 = tpu.matmul %4, %3, %cst {dimension_numbers = #tpu.dot_dimension_numbers<[1], [0], [0], [1], [0, 0, 1, 1], [], []>} : vector<2x16xf32>, vector<16x64xf32>, vector<2x64xf32> -> vector<2x64xf32>
    %10 = arith.addf %8, %9 : vector<2x64xf32>
    %11 = arith.negf %10 : vector<2x64xf32>
    %12 = math.exp %11 : vector<2x64xf32>
    %cst_9 = arith.constant 1.000000e+00 : f32
    %13 = vector.broadcast %cst_9 : f32 to vector<2x64xf32>
    %14 = arith.addf %13, %12 : vector<2x64xf32>
    %15 = arith.divf %13, %14 : vector<2x64xf32>
    %16 = vector.extract_strided_slice %15 {offsets = [0, 0], sizes = [2, 16], strides = [1, 1]} : vector<2x64xf32> to vector<2x16xf32>
    %17 = vector.extract_strided_slice %15 {offsets = [0, 16], sizes = [2, 16], strides = [1, 1]} : vector<2x64xf32> to vector<2x16xf32>
    %18 = vector.extract_strided_slice %15 {offsets = [0, 48], sizes = [2, 16], strides = [1, 1]} : vector<2x64xf32> to vector<2x16xf32>
    %19 = vector.extract_strided_slice %10 {offsets = [0, 32], sizes = [2, 16], strides = [1, 1]} : vector<2x64xf32> to vector<2x16xf32>
    %20 = math.tanh %19 : vector<2x16xf32>
    %21 = arith.mulf %17, %5 : vector<2x16xf32>
    %22 = arith.mulf %16, %20 : vector<2x16xf32>
    %23 = arith.addf %21, %22 : vector<2x16xf32>
    %24 = math.tanh %23 : vector<2x16xf32>
    %25 = arith.mulf %18, %24 : vector<2x16xf32>
    %c1_i32 = arith.constant 1 : i32
    %26 = arith.index_cast %c1_i32 : i32 to index
    %c0_10 = arith.constant 0 : index
    %c0_11 = arith.constant 0 : index
    %27 = vector.load %arg1[%26, %c0_10, %c0_11] : memref<8x2x64xf32, #tpu.memory_space<vmem>>, vector<1x2x64xf32>
    %28 = vector.shape_cast %27 : vector<1x2x64xf32> to vector<2x64xf32>
    %cst_12 = arith.constant dense<0.000000e+00> : vector<2x64xf32>
    %29 = tpu.matmul %25, %3, %cst_12 {dimension_numbers = #tpu.dot_dimension_numbers<[1], [0], [0], [1], [0, 0, 1, 1], [], []>} : vector<2x16xf32>, vector<16x64xf32>, vector<2x64xf32> -> vector<2x64xf32>
    %30 = arith.addf %28, %29 : vector<2x64xf32>
    %31 = arith.negf %30 : vector<2x64xf32>
    %32 = math.exp %31 : vector<2x64xf32>
    %cst_13 = arith.constant 1.000000e+00 : f32
    %33 = vector.broadcast %cst_13 : f32 to vector<2x64xf32>
    %34 = arith.addf %33, %32 : vector<2x64xf32>
    %35 = arith.divf %33, %34 : vector<2x64xf32>
    %36 = vector.extract_strided_slice %35 {offsets = [0, 0], sizes = [2, 16], strides = [1, 1]} : vector<2x64xf32> to vector<2x16xf32>
    %37 = vector.extract_strided_slice %35 {offsets = [0, 16], sizes = [2, 16], strides = [1, 1]} : vector<2x64xf32> to vector<2x16xf32>
    %38 = vector.extract_strided_slice %35 {offsets = [0, 48], sizes = [2, 16], strides = [1, 1]} : vector<2x64xf32> to vector<2x16xf32>
    %39 = vector.extract_strided_slice %30 {offsets = [0, 32], sizes = [2, 16], strides = [1, 1]} : vector<2x64xf32> to vector<2x16xf32>
    %40 = math.tanh %39 : vector<2x16xf32>
    %41 = arith.mulf %37, %23 : vector<2x16xf32>
    %42 = arith.mulf %36, %40 : vector<2x16xf32>
    %43 = arith.addf %41, %42 : vector<2x16xf32>
    %44 = math.tanh %43 : vector<2x16xf32>
    %45 = arith.mulf %38, %44 : vector<2x16xf32>
    %c2_i32 = arith.constant 2 : i32
    %46 = arith.index_cast %c2_i32 : i32 to index
    %c0_14 = arith.constant 0 : index
    %c0_15 = arith.constant 0 : index
    %47 = vector.load %arg1[%46, %c0_14, %c0_15] : memref<8x2x64xf32, #tpu.memory_space<vmem>>, vector<1x2x64xf32>
    %48 = vector.shape_cast %47 : vector<1x2x64xf32> to vector<2x64xf32>
    %cst_16 = arith.constant dense<0.000000e+00> : vector<2x64xf32>
    %49 = tpu.matmul %45, %3, %cst_16 {dimension_numbers = #tpu.dot_dimension_numbers<[1], [0], [0], [1], [0, 0, 1, 1], [], []>} : vector<2x16xf32>, vector<16x64xf32>, vector<2x64xf32> -> vector<2x64xf32>
    %50 = arith.addf %48, %49 : vector<2x64xf32>
    %51 = arith.negf %50 : vector<2x64xf32>
    %52 = math.exp %51 : vector<2x64xf32>
    %cst_17 = arith.constant 1.000000e+00 : f32
    %53 = vector.broadcast %cst_17 : f32 to vector<2x64xf32>
    %54 = arith.addf %53, %52 : vector<2x64xf32>
    %55 = arith.divf %53, %54 : vector<2x64xf32>
    %56 = vector.extract_strided_slice %55 {offsets = [0, 0], sizes = [2, 16], strides = [1, 1]} : vector<2x64xf32> to vector<2x16xf32>
    %57 = vector.extract_strided_slice %55 {offsets = [0, 16], sizes = [2, 16], strides = [1, 1]} : vector<2x64xf32> to vector<2x16xf32>
    %58 = vector.extract_strided_slice %55 {offsets = [0, 48], sizes = [2, 16], strides = [1, 1]} : vector<2x64xf32> to vector<2x16xf32>
    %59 = vector.extract_strided_slice %50 {offsets = [0, 32], sizes = [2, 16], strides = [1, 1]} : vector<2x64xf32> to vector<2x16xf32>
    %60 = math.tanh %59 : vector<2x16xf32>
    %61 = arith.mulf %57, %43 : vector<2x16xf32>
    %62 = arith.mulf %56, %60 : vector<2x16xf32>
    %63 = arith.addf %61, %62 : vector<2x16xf32>
    %64 = math.tanh %63 : vector<2x16xf32>
    %65 = arith.mulf %58, %64 : vector<2x16xf32>
    %c3_i32 = arith.constant 3 : i32
    %66 = arith.index_cast %c3_i32 : i32 to index
    %c0_18 = arith.constant 0 : index
    %c0_19 = arith.constant 0 : index
    %67 = vector.load %arg1[%66, %c0_18, %c0_19] : memref<8x2x64xf32, #tpu.memory_space<vmem>>, vector<1x2x64xf32>
    %68 = vector.shape_cast %67 : vector<1x2x64xf32> to vector<2x64xf32>
    %cst_20 = arith.constant dense<0.000000e+00> : vector<2x64xf32>
    %69 = tpu.matmul %65, %3, %cst_20 {dimension_numbers = #tpu.dot_dimension_numbers<[1], [0], [0], [1], [0, 0, 1, 1], [], []>} : vector<2x16xf32>, vector<16x64xf32>, vector<2x64xf32> -> vector<2x64xf32>
    %70 = arith.addf %68, %69 : vector<2x64xf32>
    %71 = arith.negf %70 : vector<2x64xf32>
    %72 = math.exp %71 : vector<2x64xf32>
    %cst_21 = arith.constant 1.000000e+00 : f32
    %73 = vector.broadcast %cst_21 : f32 to vector<2x64xf32>
    %74 = arith.addf %73, %72 : vector<2x64xf32>
    %75 = arith.divf %73, %74 : vector<2x64xf32>
    %76 = vector.extract_strided_slice %75 {offsets = [0, 0], sizes = [2, 16], strides = [1, 1]} : vector<2x64xf32> to vector<2x16xf32>
    %77 = vector.extract_strided_slice %75 {offsets = [0, 16], sizes = [2, 16], strides = [1, 1]} : vector<2x64xf32> to vector<2x16xf32>
    %78 = vector.extract_strided_slice %75 {offsets = [0, 48], sizes = [2, 16], strides = [1, 1]} : vector<2x64xf32> to vector<2x16xf32>
    %79 = vector.extract_strided_slice %70 {offsets = [0, 32], sizes = [2, 16], strides = [1, 1]} : vector<2x64xf32> to vector<2x16xf32>
    %80 = math.tanh %79 : vector<2x16xf32>
    %81 = arith.mulf %77, %63 : vector<2x16xf32>
    %82 = arith.mulf %76, %80 : vector<2x16xf32>
    %83 = arith.addf %81, %82 : vector<2x16xf32>
    %84 = math.tanh %83 : vector<2x16xf32>
    %85 = arith.mulf %78, %84 : vector<2x16xf32>
    %c4_i32 = arith.constant 4 : i32
    %86 = arith.index_cast %c4_i32 : i32 to index
    %c0_22 = arith.constant 0 : index
    %c0_23 = arith.constant 0 : index
    %87 = vector.load %arg1[%86, %c0_22, %c0_23] : memref<8x2x64xf32, #tpu.memory_space<vmem>>, vector<1x2x64xf32>
    %88 = vector.shape_cast %87 : vector<1x2x64xf32> to vector<2x64xf32>
    %cst_24 = arith.constant dense<0.000000e+00> : vector<2x64xf32>
    %89 = tpu.matmul %85, %3, %cst_24 {dimension_numbers = #tpu.dot_dimension_numbers<[1], [0], [0], [1], [0, 0, 1, 1], [], []>} : vector<2x16xf32>, vector<16x64xf32>, vector<2x64xf32> -> vector<2x64xf32>
    %90 = arith.addf %88, %89 : vector<2x64xf32>
    %91 = arith.negf %90 : vector<2x64xf32>
    %92 = math.exp %91 : vector<2x64xf32>
    %cst_25 = arith.constant 1.000000e+00 : f32
    %93 = vector.broadcast %cst_25 : f32 to vector<2x64xf32>
    %94 = arith.addf %93, %92 : vector<2x64xf32>
    %95 = arith.divf %93, %94 : vector<2x64xf32>
    %96 = vector.extract_strided_slice %95 {offsets = [0, 0], sizes = [2, 16], strides = [1, 1]} : vector<2x64xf32> to vector<2x16xf32>
    %97 = vector.extract_strided_slice %95 {offsets = [0, 16], sizes = [2, 16], strides = [1, 1]} : vector<2x64xf32> to vector<2x16xf32>
    %98 = vector.extract_strided_slice %95 {offsets = [0, 48], sizes = [2, 16], strides = [1, 1]} : vector<2x64xf32> to vector<2x16xf32>
    %99 = vector.extract_strided_slice %90 {offsets = [0, 32], sizes = [2, 16], strides = [1, 1]} : vector<2x64xf32> to vector<2x16xf32>
    %100 = math.tanh %99 : vector<2x16xf32>
    %101 = arith.mulf %97, %83 : vector<2x16xf32>
    %102 = arith.mulf %96, %100 : vector<2x16xf32>
    %103 = arith.addf %101, %102 : vector<2x16xf32>
    %104 = math.tanh %103 : vector<2x16xf32>
    %105 = arith.mulf %98, %104 : vector<2x16xf32>
    %c5_i32 = arith.constant 5 : i32
    %106 = arith.index_cast %c5_i32 : i32 to index
    %c0_26 = arith.constant 0 : index
    %c0_27 = arith.constant 0 : index
    %107 = vector.load %arg1[%106, %c0_26, %c0_27] : memref<8x2x64xf32, #tpu.memory_space<vmem>>, vector<1x2x64xf32>
    %108 = vector.shape_cast %107 : vector<1x2x64xf32> to vector<2x64xf32>
    %cst_28 = arith.constant dense<0.000000e+00> : vector<2x64xf32>
    %109 = tpu.matmul %105, %3, %cst_28 {dimension_numbers = #tpu.dot_dimension_numbers<[1], [0], [0], [1], [0, 0, 1, 1], [], []>} : vector<2x16xf32>, vector<16x64xf32>, vector<2x64xf32> -> vector<2x64xf32>
    %110 = arith.addf %108, %109 : vector<2x64xf32>
    %111 = arith.negf %110 : vector<2x64xf32>
    %112 = math.exp %111 : vector<2x64xf32>
    %cst_29 = arith.constant 1.000000e+00 : f32
    %113 = vector.broadcast %cst_29 : f32 to vector<2x64xf32>
    %114 = arith.addf %113, %112 : vector<2x64xf32>
    %115 = arith.divf %113, %114 : vector<2x64xf32>
    %116 = vector.extract_strided_slice %115 {offsets = [0, 0], sizes = [2, 16], strides = [1, 1]} : vector<2x64xf32> to vector<2x16xf32>
    %117 = vector.extract_strided_slice %115 {offsets = [0, 16], sizes = [2, 16], strides = [1, 1]} : vector<2x64xf32> to vector<2x16xf32>
    %118 = vector.extract_strided_slice %115 {offsets = [0, 48], sizes = [2, 16], strides = [1, 1]} : vector<2x64xf32> to vector<2x16xf32>
    %119 = vector.extract_strided_slice %110 {offsets = [0, 32], sizes = [2, 16], strides = [1, 1]} : vector<2x64xf32> to vector<2x16xf32>
    %120 = math.tanh %119 : vector<2x16xf32>
    %121 = arith.mulf %117, %103 : vector<2x16xf32>
    %122 = arith.mulf %116, %120 : vector<2x16xf32>
    %123 = arith.addf %121, %122 : vector<2x16xf32>
    %124 = math.tanh %123 : vector<2x16xf32>
    %125 = arith.mulf %118, %124 : vector<2x16xf32>
    %c6_i32 = arith.constant 6 : i32
    %126 = arith.index_cast %c6_i32 : i32 to index
    %c0_30 = arith.constant 0 : index
    %c0_31 = arith.constant 0 : index
    %127 = vector.load %arg1[%126, %c0_30, %c0_31] : memref<8x2x64xf32, #tpu.memory_space<vmem>>, vector<1x2x64xf32>
    %128 = vector.shape_cast %127 : vector<1x2x64xf32> to vector<2x64xf32>
    %cst_32 = arith.constant dense<0.000000e+00> : vector<2x64xf32>
    %129 = tpu.matmul %125, %3, %cst_32 {dimension_numbers = #tpu.dot_dimension_numbers<[1], [0], [0], [1], [0, 0, 1, 1], [], []>} : vector<2x16xf32>, vector<16x64xf32>, vector<2x64xf32> -> vector<2x64xf32>
    %130 = arith.addf %128, %129 : vector<2x64xf32>
    %131 = arith.negf %130 : vector<2x64xf32>
    %132 = math.exp %131 : vector<2x64xf32>
    %cst_33 = arith.constant 1.000000e+00 : f32
    %133 = vector.broadcast %cst_33 : f32 to vector<2x64xf32>
    %134 = arith.addf %133, %132 : vector<2x64xf32>
    %135 = arith.divf %133, %134 : vector<2x64xf32>
    %136 = vector.extract_strided_slice %135 {offsets = [0, 0], sizes = [2, 16], strides = [1, 1]} : vector<2x64xf32> to vector<2x16xf32>
    %137 = vector.extract_strided_slice %135 {offsets = [0, 16], sizes = [2, 16], strides = [1, 1]} : vector<2x64xf32> to vector<2x16xf32>
    %138 = vector.extract_strided_slice %135 {offsets = [0, 48], sizes = [2, 16], strides = [1, 1]} : vector<2x64xf32> to vector<2x16xf32>
    %139 = vector.extract_strided_slice %130 {offsets = [0, 32], sizes = [2, 16], strides = [1, 1]} : vector<2x64xf32> to vector<2x16xf32>
    %140 = math.tanh %139 : vector<2x16xf32>
    %141 = arith.mulf %137, %123 : vector<2x16xf32>
    %142 = arith.mulf %136, %140 : vector<2x16xf32>
    %143 = arith.addf %141, %142 : vector<2x16xf32>
    %144 = math.tanh %143 : vector<2x16xf32>
    %145 = arith.mulf %138, %144 : vector<2x16xf32>
    %c7_i32 = arith.constant 7 : i32
    %146 = arith.index_cast %c7_i32 : i32 to index
    %c0_34 = arith.constant 0 : index
    %c0_35 = arith.constant 0 : index
    %147 = vector.load %arg1[%146, %c0_34, %c0_35] : memref<8x2x64xf32, #tpu.memory_space<vmem>>, vector<1x2x64xf32>
    %148 = vector.shape_cast %147 : vector<1x2x64xf32> to vector<2x64xf32>
    %cst_36 = arith.constant dense<0.000000e+00> : vector<2x64xf32>
    %149 = tpu.matmul %145, %3, %cst_36 {dimension_numbers = #tpu.dot_dimension_numbers<[1], [0], [0], [1], [0, 0, 1, 1], [], []>} : vector<2x16xf32>, vector<16x64xf32>, vector<2x64xf32> -> vector<2x64xf32>
    %150 = arith.addf %148, %149 : vector<2x64xf32>
    %151 = arith.negf %150 : vector<2x64xf32>
    %152 = math.exp %151 : vector<2x64xf32>
    %cst_37 = arith.constant 1.000000e+00 : f32
    %153 = vector.broadcast %cst_37 : f32 to vector<2x64xf32>
    %154 = arith.addf %153, %152 : vector<2x64xf32>
    %155 = arith.divf %153, %154 : vector<2x64xf32>
    %156 = vector.extract_strided_slice %155 {offsets = [0, 0], sizes = [2, 16], strides = [1, 1]} : vector<2x64xf32> to vector<2x16xf32>
    %157 = vector.extract_strided_slice %155 {offsets = [0, 16], sizes = [2, 16], strides = [1, 1]} : vector<2x64xf32> to vector<2x16xf32>
    %158 = vector.extract_strided_slice %155 {offsets = [0, 48], sizes = [2, 16], strides = [1, 1]} : vector<2x64xf32> to vector<2x16xf32>
    %159 = vector.extract_strided_slice %150 {offsets = [0, 32], sizes = [2, 16], strides = [1, 1]} : vector<2x64xf32> to vector<2x16xf32>
    %160 = math.tanh %159 : vector<2x16xf32>
    %161 = arith.mulf %157, %143 : vector<2x16xf32>
    %162 = arith.mulf %156, %160 : vector<2x16xf32>
    %163 = arith.addf %161, %162 : vector<2x16xf32>
    %164 = math.tanh %163 : vector<2x16xf32>
    %165 = arith.mulf %158, %164 : vector<2x16xf32>
    %c8_i32 = arith.constant 8 : i32
    %c0_38 = arith.constant 0 : index
    %c0_39 = arith.constant 0 : index
    %166 = vector.load %arg6[%c0_38, %c0_39] : memref<2x16xf32, #tpu.memory_space<vmem>>, vector<2x16xf32>
    tpu.vector_store %arg6[%c0_38, %c0_39], %165 {strides = array<i32>} : memref<2x16xf32, #tpu.memory_space<vmem>>, vector<2x16xf32>,
    %c0_40 = arith.constant 0 : index
    %c0_41 = arith.constant 0 : index
    %167 = vector.load %arg7[%c0_40, %c0_41] : memref<2x16xf32, #tpu.memory_space<vmem>>, vector<2x16xf32>
    tpu.vector_store %arg7[%c0_40, %c0_41], %163 {strides = array<i32>} : memref<2x16xf32, #tpu.memory_space<vmem>>, vector<2x16xf32>,
    %c0_i32_42 = arith.constant 0 : i32
    %168 = arith.cmpi eq, %arg0, %c0_i32_42 : i32
    %169 = arith.extui %168 : i1 to i32
    %c0_i32_43 = arith.constant 0 : i32
    %170 = arith.cmpi ne, %169, %c0_i32_43 : i32
    scf.if %170 {
      %c0_44 = arith.constant 0 : index
      %c0_45 = arith.constant 0 : index
      %171 = vector.load %arg3[%c0_44, %c0_45] : memref<16x21xf32, #tpu.memory_space<vmem>>, vector<16x21xf32>
      %cst_46 = arith.constant dense<0.000000e+00> : vector<2x21xf32>
      %172 = tpu.matmul %165, %171, %cst_46 {dimension_numbers = #tpu.dot_dimension_numbers<[1], [0], [0], [1], [0, 0, 1, 1], [], []>} : vector<2x16xf32>, vector<16x21xf32>, vector<2x21xf32> -> vector<2x21xf32>
      %c0_47 = arith.constant 0 : index
      %c0_48 = arith.constant 0 : index
      %173 = vector.load %arg4[%c0_47, %c0_48] : memref<1x21xf32, #tpu.memory_space<vmem>>, vector<1x21xf32>
      %174 = vector.broadcast %173 : vector<1x21xf32> to vector<2x21xf32>
      %175 = arith.addf %172, %174 : vector<2x21xf32>
      %c0_49 = arith.constant 0 : index
      %c0_50 = arith.constant 0 : index
      %176 = vector.load %arg5[%c0_49, %c0_50] : memref<2x21xf32, #tpu.memory_space<vmem>>, vector<2x21xf32>
      tpu.vector_store %arg5[%c0_49, %c0_50], %175 {strides = array<i32>} : memref<2x21xf32, #tpu.memory_space<vmem>>, vector<2x21xf32>,
    } else {
    }
    return
  }
  func.func @transform_0(%arg0: i32) -> (i32, i32, i32) {
    %c0_i32 = arith.constant 0 : i32
    %c0_i32_0 = arith.constant 0 : i32
    %c0_i32_1 = arith.constant 0 : i32
    return %arg0, %c0_i32, %c0_i32_0 : i32, i32, i32
  }
  func.func @transform_1(%arg0: i32) -> (i32, i32) {
    %c0_i32 = arith.constant 0 : i32
    %c0_i32_0 = arith.constant 0 : i32
    %c0_i32_1 = arith.constant 0 : i32
    return %c0_i32, %c0_i32_0 : i32, i32
  }
  func.func @transform_2(%arg0: i32) -> (i32, i32) {
    %c0_i32 = arith.constant 0 : i32
    %c0_i32_0 = arith.constant 0 : i32
    %c0_i32_1 = arith.constant 0 : i32
    return %c0_i32, %c0_i32_0 : i32, i32
  }
  func.func @transform_3(%arg0: i32) -> (i32, i32) {
    %c0_i32 = arith.constant 0 : i32
    %c0_i32_0 = arith.constant 0 : i32
    %c0_i32_1 = arith.constant 0 : i32
    return %c0_i32, %c0_i32_0 : i32, i32
  }
  func.func @transform_4(%arg0: i32) -> (i32, i32) {
    %c0_i32 = arith.constant 0 : i32
    %c0_i32_0 = arith.constant 0 : i32
    %c0_i32_1 = arith.constant 0 : i32
    return %c0_i32, %c0_i32_0 : i32, i32
  }
}

</mosaic_0001>

<bundles_post_ra>
// kernel: tpu_custom_call.1
= control target key start
LH: loop header
LB: loop body
LE: loop exit
PB: predicated region body
PF: predicated region fallthrough
CT: control target
= control target key end

     0   :  { %9 = vsyncpa [#allocation5], 0  ;;  %s1433_s0 = inlined_call_operand.hbm [shape: f32[8,2,64], index: 0, kind: input, shape index: {}]   ;;  %s1434_s1 = inlined_call_operand.hbm [shape: f32[16,64], index: 1, kind: input, shape index: {}]   ;;  %s1435_s2 = inlined_call_operand.hbm [shape: f32[16,21], index: 2, kind: input, shape index: {}]   ;;  %s1436_s3 = inlined_call_operand.vmem [shape: f32[1,21], index: 3, kind: input, shape index: {}]   ;;  %s1437_s4 = inlined_call_operand.hbm [shape: f32[2,21], index: 4, kind: output, shape index: {}]  }
   0x1   :  { %10 = vsyncpa [#allocation8], 0 }
   0x2   :  { %11 = vsyncpa [#allocation6], 0  ;;  %s1273_s15 = smov [#allocation7]  }
   0x3   :  { %s29_s16 = sshll.u32 %s1273_s15, 4  ;;  %s30_s16 = int_to_ptr.vmem [resolvable:$true] %s29_s16 }
   0x4   :  { %s1195_s17 = scalar_lea.vmem %s30_s16, 256  ;;  %p1200_p1 = scmp.lt.s32.totalorder %s30_s16, %s30_s16 }
   0x5   :  { %p1196_p0 = scmp.ne.s32.totalorder %s30_s16, %s1195_s17  ;;  %p1201_p2 = scmp.lt.s32.totalorder %s1195_s17, %s1195_s17 }
   0x7   :  { %p1202_p3 = por %p1201_p2, %p1200_p1 }
   0x9   :  { %p1203_p4 = pnand %p1202_p3, %p1196_p0 }
   0xb   :  { %1206 = shalt.err (!%p1203_p4)
}
   0xc   :  { %s1274_s18 = smov 128   ;;  %s1275_s19 = smov 8  }
   0xd   :  { %35 = dma.hbm_to_vmem [thread:$0]  %s1434_s1, 256, %s30_s16, [#allocation8], %s1274_s18, %s1274_s18, %s1275_s19  }
   0xe   :  { %s1276_s22 = smov [#allocation4]  }
   0xf   :  { %s17_s23 = sshll.u32 %s1276_s22, 4  ;;  %s18_s23 = int_to_ptr.vmem [resolvable:$true] %s17_s23 }
  0x10   :  { %s1215_s24 = scalar_lea.vmem %s18_s23, 256  ;;  %p1220_p6 = scmp.lt.s32.totalorder %s18_s23, %s18_s23 }
  0x11   :  { %p1216_p5 = scmp.ne.s32.totalorder %s18_s23, %s1215_s24  ;;  %p1221_p7 = scmp.lt.s32.totalorder %s1215_s24, %s1215_s24 }
  0x13   :  { %p1222_p8 = por %p1221_p7, %p1220_p6 }
  0x15   :  { %p1223_p9 = pnand %p1222_p8, %p1216_p5 }
  0x17   :  { %1226 = shalt.err (!%p1223_p9)
}
  0x18   :  { %s1277_s25 = smov 32   ;;  %s1278_s26 = smov 2  }
  0x19   :  { %23 = dma.hbm_to_vmem [thread:$0]  %s1433_s0, 256, %s18_s23, [#allocation5], %s1277_s25, %s1277_s25, %s1278_s26  }
  0x1a   :  { %s1279_s29 = smov [#allocation9]  }
  0x1b   :  { %s41_s1 = sshll.u32 %s1279_s29, 4  ;;  %s42_s1 = int_to_ptr.vmem [resolvable:$true] %s41_s1 }
  0x1c   :  { %s1235_s30 = scalar_lea.vmem %s42_s1, 256  ;;  %p1240_p11 = scmp.lt.s32.totalorder %s42_s1, %s42_s1 }
  0x1d   :  { %p1236_p10 = scmp.ne.s32.totalorder %s42_s1, %s1235_s30  ;;  %p1241_p12 = scmp.lt.s32.totalorder %s1235_s30, %s1235_s30 }
  0x1f   :  { %p1242_p13 = por %p1241_p12, %p1240_p11 }
  0x21   :  { %p1243_p0 = pnand %p1242_p13, %p1236_p10 }
  0x23   :  { %1246 = shalt.err (!%p1243_p0)
}
  0x24   :  { %47 = dma.hbm_to_vmem [thread:$0]  %s1435_s2, 256, %s42_s1, [#allocation8], %s1274_s18, %s1274_s18, %s1275_s19  }
  0x25   :  { %1267 = dma.done.wait [#allocation5], 256  }
  0x26   :  { %1268 = vsyncadd [#allocation5], 4294967040 }
  0x27   :  { %1269 = dma.done.wait [#allocation8], 512  }
  0x28   :  { %1270 = vsyncadd [#allocation8], 4294966784  ;;  %vm63_vm0 = vcmask 123904   ;;  %v1280_v0 = vmov 0.0   ;;  %vm1281_vm1 = vmmov 0   ;;  %v1333_v1 = vld [vmem:[#allocation7 + $0x8] sm:$0xff] }
  0x29   :  { %1046 = vmatprep.subr.mxu0 %v1280_v0  ;;  %1050 = vmatprep.mubr.msk.f32.mxu0 %vm1281_vm1, %v1280_v0  ;;  %64 = vst.msk [vmem:[#allocation2] sm:$0x3] %vm63_vm0, %v1280_v0  ;;  %65 = vst.msk [vmem:[#allocation3] sm:$0x3] %vm63_vm0, %v1280_v0  ;;  %v1335_v2 = vld [vmem:[#allocation7] sm:$0xff]  ;;  %vm71_vm2 = vcmask 130048  }
  0x2a   :  { %1053 = vmatprep.subr.mxu1 %v1280_v0  ;;  %1057 = vmatprep.mubr.msk.f32.mxu1 %vm1281_vm1, %v1280_v0  ;;  %v70_v4 = vld [vmem:[#allocation4] sm:$0x3]  ;;  %s1282_s0 = smov 96   ;;  %s1283_s2 = smov 16   ;;  %v175_v24 = vld [vmem:[#allocation4 + $0x2] sm:$0x3] }
  0x2b   :  { %1047 = vmatpush3.msra.mxu0 %v1333_v1  ;;  %1054 = vmatpush3.msra.mxu1 %v1333_v1  ;;  %s1284_s7 = smov 80   ;;  %v277_v42 = vld [vmem:[#allocation4 + $0x4] sm:$0x3]  ;;  %v379_v60 = vld [vmem:[#allocation4 + $0x6] sm:$0x3]  ;;  %s1285_s8 = smov 112  }
  0x2c   :  { %1048 = vmatprep.subr.mxu0 %v1280_v0  ;;  %1055 = vmatprep.subr.mxu1 %v1280_v0  ;;  %s1286_s11 = smov [#allocation10]   ;;  %vm983_vm3 = vcmask 164864  }
  0x2d   :  { %1049 = vmatpush3.msra.mxu0 %v1335_v2  ;;  %1056 = vmatpush3.msra.mxu1 %v1335_v2  ;;  %s991_s12 = sshll.u32 %s1286_s11, 4  ;;  %s992_s12 = int_to_ptr.vmem [resolvable:$true] %s991_s12 }
  0x2e   :  { %1060 = vmatprep.subr.mxu0 %v1280_v0  ;;  %1067 = vmatprep.subr.mxu1 %v1280_v0  ;;  %s1247_s13 = scalar_lea.vmem %s992_s12, 32  ;;  %p1252_p2 = scmp.lt.s32.totalorder %s992_s12, %s992_s12 }
  0x2f   :  { %p1248_p1 = scmp.ne.s32.totalorder %s992_s12, %s1247_s13  ;;  %p1253_p3 = scmp.lt.s32.totalorder %s1247_s13, %s1247_s13 }
  0x30   :  { %v68_v3 = vld [vmem:[#allocation2] sm:$0x3]  ;;  %v69_v9 = vld [vmem:[#allocation3] sm:$0x3] }
  0x31   :  { %1051 = vmatmul.mubr.msk.f32.vlgmr.msra.gmra.mxu0 %vm71_vm2, %v68_v3  ;;  %p1254_p4 = por %p1253_p3, %p1252_p2 }
  0x32   :  { %1061 = vmatpush3.msra.mxu0 %v1333_v1  ;;  %1064 = vmatprep.mubr.msk.f32.mxu0 %vm1281_vm1, %v1280_v0 }
  0x33   :  { %1062 = vmatprep.subr.mxu0 %v1280_v0  ;;  %p1255_p5 = pnand %p1254_p4, %p1248_p1 }
  0x34   :  { %1063 = vmatpush3.msra.mxu0 %v1335_v2 }
  0x35   :  { %1074 = vmatprep.subr.mxu0 %v1280_v0 }
  0xf1   :  { %v141_v5 = vpop.f32.mrf.mxu0 }
  0xf2   :  { %v145_v6 = vadd.f32 %v141_v5, %v70_v4 }
  0xf3   :  { %v1052_v7 = vpop.f32.mrf.mxu0 }
  0xf4   :  { %1123 = vtanh.f32 %v145_v6  ;;  %v1002_v10 = vmul.f32 -1.442695, %v145_v6 }
  0xf6   :  { %1125 = vpow2.f32 %v1002_v10 }
 0x101   :  { %v1124_v8 = vpop.eup %1123 }
 0x102   :  { %159 = vrot.lane.b32.xlu0 %v1124_v8, %s1282_s0 }
 0x103   :  { %v1126_v11 = vpop.eup %1125 }
 0x104   :  { %v149_v12 = vadd.f32 1.0, %v1126_v11 }
 0x106   :  { %154 = vrot.lane.b32.xlu0 %v69_v9, %s1283_s2  ;;  %1127 = vrcp.f32 %v149_v12 }
 0x113   :  { %v1128_v13 = vpop.eup %1127 }
 0x174   :  { %v160_v14 = vpop.permute.xlu0 %159 }
 0x175   :  { %v162_v15 = vmul.f32 %v1128_v13, %v160_v14 }
 0x177   :  { %164 = vrot.lane.b32.xlu1 %v162_v15, %s1283_s2 }
 0x178   :  { %v155_v16 = vpop.permute.xlu0 %154 }
 0x179   :  { %v157_v17 = vmul.f32 %v1128_v13, %v155_v16 }
 0x1e9   :  { %v165_v18 = vpop.permute.xlu1 %164 }
 0x1ea   :  { %v167_v19 = vadd.f32 %v165_v18, %v157_v17  ;;  %v481_v17 = vld [vmem:[#allocation4 + $0x8] sm:$0x3] }
 0x1ec   :  { %1129 = vtanh.f32 %v167_v19 }
 0x1f9   :  { %v1130_v20 = vpop.eup %1129 }
 0x1fa   :  { %170 = vrot.lane.b32.xlu1 %v1130_v20, %s1277_s25 }
 0x26c   :  { %v171_v21 = vpop.permute.xlu1 %170 }
 0x26d   :  { %v173_v22 = vmul.f32 %v1128_v13, %v171_v21 }
 0x26f   :  { %177 = vrot.lane.b32.xlu0 %v173_v22, %s1284_s7 }
 0x2e1   :  { %v178_v23 = vpop.permute.xlu0 %177 }
 0x2e2   :  { %1058 = vmatmul.mubr.msk.f32.vlgmr.msra.gmra.mxu1 %vm71_vm2, %v178_v23 }
 0x2e3   :  { %1068 = vmatpush3.msra.mxu1 %v1333_v1  ;;  %1071 = vmatprep.mubr.msk.f32.mxu1 %vm1281_vm1, %v1280_v0 }
 0x2e4   :  { %1069 = vmatprep.subr.mxu1 %v1280_v0 }
 0x2e5   :  { %1070 = vmatpush3.msra.mxu1 %v1335_v2 }
 0x2e6   :  { %1081 = vmatprep.subr.mxu1 %v1280_v0 }
 0x3a2   :  { %v247_v25 = vpop.f32.mrf.mxu1 }
 0x3a3   :  { %v251_v26 = vadd.f32 %v247_v25, %v175_v24 }
 0x3a4   :  { %v1059_v27 = vpop.f32.mrf.mxu1 }
 0x3a5   :  { %1131 = vtanh.f32 %v251_v26  ;;  %v1004_v29 = vmul.f32 -1.442695, %v251_v26 }
 0x3a7   :  { %1133 = vpow2.f32 %v1004_v29 }
 0x3b2   :  { %v1132_v28 = vpop.eup %1131 }
 0x3b3   :  { %261 = vrot.lane.b32.xlu1 %v1132_v28, %s1282_s0 }
 0x3b4   :  { %v1134_v30 = vpop.eup %1133 }
 0x3b5   :  { %v255_v31 = vadd.f32 1.0, %v1134_v30 }
 0x3b7   :  { %1135 = vrcp.f32 %v255_v31 }
 0x3c4   :  { %v1136_v32 = vpop.eup %1135 }
 0x3c5   :  { %v259_v35 = vmul.f32 %v1136_v32, %v167_v19 }
 0x425   :  { %v262_v33 = vpop.permute.xlu1 %261 }
 0x426   :  { %v264_v34 = vmul.f32 %v1136_v32, %v262_v33 }
 0x428   :  { %266 = vrot.lane.b32.xlu0 %v264_v34, %s1283_s2 }
 0x49a   :  { %v267_v36 = vpop.permute.xlu0 %266 }
 0x49b   :  { %v269_v37 = vadd.f32 %v267_v36, %v259_v35  ;;  %v583_v35 = vld [vmem:[#allocation4 + $0xa] sm:$0x3] }
 0x49d   :  { %1137 = vtanh.f32 %v269_v37 }
 0x4aa   :  { %v1138_v38 = vpop.eup %1137 }
 0x4ab   :  { %272 = vrot.lane.b32.xlu1 %v1138_v38, %s1277_s25 }
 0x51d   :  { %v273_v39 = vpop.permute.xlu1 %272 }
 0x51e   :  { %v275_v40 = vmul.f32 %v1136_v32, %v273_v39 }
 0x520   :  { %279 = vrot.lane.b32.xlu0 %v275_v40, %s1284_s7 }
 0x592   :  { %v280_v41 = vpop.permute.xlu0 %279 }
 0x593   :  { %1065 = vmatmul.mubr.msk.f32.vlgmr.msra.gmra.mxu0 %vm71_vm2, %v280_v41 }
 0x594   :  { %1075 = vmatpush3.msra.mxu0 %v1333_v1  ;;  %1078 = vmatprep.mubr.msk.f32.mxu0 %vm1281_vm1, %v1280_v0 }
 0x595   :  { %1076 = vmatprep.subr.mxu0 %v1280_v0 }
 0x596   :  { %1077 = vmatpush3.msra.mxu0 %v1335_v2 }
 0x597   :  { %1088 = vmatprep.subr.mxu0 %v1280_v0 }
 0x653   :  { %v349_v43 = vpop.f32.mrf.mxu0 }
 0x654   :  { %v353_v44 = vadd.f32 %v349_v43, %v277_v42 }
 0x655   :  { %v1066_v45 = vpop.f32.mrf.mxu0 }
 0x656   :  { %1139 = vtanh.f32 %v353_v44  ;;  %v1006_v47 = vmul.f32 -1.442695, %v353_v44 }
 0x658   :  { %1141 = vpow2.f32 %v1006_v47 }
 0x663   :  { %v1140_v46 = vpop.eup %1139 }
 0x664   :  { %363 = vrot.lane.b32.xlu1 %v1140_v46, %s1282_s0 }
 0x665   :  { %v1142_v48 = vpop.eup %1141 }
 0x666   :  { %v357_v49 = vadd.f32 1.0, %v1142_v48 }
 0x668   :  { %1143 = vrcp.f32 %v357_v49 }
 0x675   :  { %v1144_v50 = vpop.eup %1143 }
 0x676   :  { %v361_v53 = vmul.f32 %v1144_v50, %v269_v37 }
 0x6d6   :  { %v364_v51 = vpop.permute.xlu1 %363 }
 0x6d7   :  { %v366_v52 = vmul.f32 %v1144_v50, %v364_v51  ;;  %v685_v51 = vld [vmem:[#allocation4 + $0xc] sm:$0x3] }
 0x6d9   :  { %368 = vrot.lane.b32.xlu0 %v366_v52, %s1283_s2 }
 0x74b   :  { %v369_v54 = vpop.permute.xlu0 %368 }
 0x74c   :  { %v371_v55 = vadd.f32 %v369_v54, %v361_v53 }
 0x74e   :  { %1145 = vtanh.f32 %v371_v55 }
 0x75b   :  { %v1146_v56 = vpop.eup %1145 }
 0x75c   :  { %374 = vrot.lane.b32.xlu1 %v1146_v56, %s1277_s25 }
 0x7ce   :  { %v375_v57 = vpop.permute.xlu1 %374 }
 0x7cf   :  { %v377_v58 = vmul.f32 %v1144_v50, %v375_v57 }
 0x7d1   :  { %381 = vrot.lane.b32.xlu0 %v377_v58, %s1284_s7 }
 0x843   :  { %v382_v59 = vpop.permute.xlu0 %381 }
 0x844   :  { %1072 = vmatmul.mubr.msk.f32.vlgmr.msra.gmra.mxu1 %vm71_vm2, %v382_v59 }
 0x845   :  { %1082 = vmatpush3.msra.mxu1 %v1333_v1  ;;  %1085 = vmatprep.mubr.msk.f32.mxu1 %vm1281_vm1, %v1280_v0 }
 0x846   :  { %1083 = vmatprep.subr.mxu1 %v1280_v0 }
 0x847   :  { %1084 = vmatpush3.msra.mxu1 %v1335_v2 }
 0x848   :  { %1095 = vmatprep.subr.mxu1 %v1280_v0 }
 0x904   :  { %v451_v61 = vpop.f32.mrf.mxu1 }
 0x905   :  { %v455_v62 = vadd.f32 %v451_v61, %v379_v60 }
 0x906   :  { %v1073_v63 = vpop.f32.mrf.mxu1 }
 0x907   :  { %1147 = vtanh.f32 %v455_v62  ;;  %v1008_v4 = vmul.f32 -1.442695, %v455_v62 }
 0x909   :  { %1149 = vpow2.f32 %v1008_v4 }
 0x914   :  { %v1148_v3 = vpop.eup %1147 }
 0x915   :  { %465 = vrot.lane.b32.xlu1 %v1148_v3, %s1282_s0 }
 0x916   :  { %v1150_v5 = vpop.eup %1149 }
 0x917   :  { %v459_v6 = vadd.f32 1.0, %v1150_v5 }
 0x919   :  { %1151 = vrcp.f32 %v459_v6 }
 0x926   :  { %v1152_v7 = vpop.eup %1151 }
 0x927   :  { %v463_v10 = vmul.f32 %v1152_v7, %v371_v55 }
 0x987   :  { %v466_v8 = vpop.permute.xlu1 %465 }
 0x988   :  { %v468_v9 = vmul.f32 %v1152_v7, %v466_v8  ;;  %v787_v8 = vld [vmem:[#allocation4 + $0xe] sm:$0x3] }
 0x98a   :  { %470 = vrot.lane.b32.xlu0 %v468_v9, %s1283_s2 }
 0x9fc   :  { %v471_v11 = vpop.permute.xlu0 %470 }
 0x9fd   :  { %v473_v12 = vadd.f32 %v471_v11, %v463_v10 }
 0x9ff   :  { %1153 = vtanh.f32 %v473_v12 }
 0xa0c   :  { %v1154_v13 = vpop.eup %1153 }
 0xa0d   :  { %476 = vrot.lane.b32.xlu1 %v1154_v13, %s1277_s25 }
 0xa7f   :  { %v477_v14 = vpop.permute.xlu1 %476 }
 0xa80   :  { %v479_v15 = vmul.f32 %v1152_v7, %v477_v14 }
 0xa82   :  { %483 = vrot.lane.b32.xlu0 %v479_v15, %s1284_s7 }
 0xaf4   :  { %v484_v16 = vpop.permute.xlu0 %483 }
 0xaf5   :  { %1079 = vmatmul.mubr.msk.f32.vlgmr.msra.gmra.mxu0 %vm71_vm2, %v484_v16 }
 0xaf6   :  { %1089 = vmatpush3.msra.mxu0 %v1333_v1  ;;  %1092 = vmatprep.mubr.msk.f32.mxu0 %vm1281_vm1, %v1280_v0 }
 0xaf7   :  { %1090 = vmatprep.subr.mxu0 %v1280_v0 }
 0xaf8   :  { %1091 = vmatpush3.msra.mxu0 %v1335_v2 }
 0xaf9   :  { %1102 = vmatprep.subr.mxu0 %v1280_v0 }
 0xbb5   :  { %v553_v18 = vpop.f32.mrf.mxu0 }
 0xbb6   :  { %v557_v19 = vadd.f32 %v553_v18, %v481_v17 }
 0xbb7   :  { %v1080_v20 = vpop.f32.mrf.mxu0 }
 0xbb8   :  { %1155 = vtanh.f32 %v557_v19  ;;  %v1010_v22 = vmul.f32 -1.442695, %v557_v19 }
 0xbba   :  { %1157 = vpow2.f32 %v1010_v22  ;;  %v903_v22 = vld [vmem:[#allocation9 + $0x8] sm:$0xff] }
 0xbc5   :  { %v1156_v21 = vpop.eup %1155 }
 0xbc6   :  { %567 = vrot.lane.b32.xlu1 %v1156_v21, %s1282_s0 }
 0xbc7   :  { %v1158_v23 = vpop.eup %1157 }
 0xbc8   :  { %v561_v24 = vadd.f32 1.0, %v1158_v23  ;;  %v902_v23 = vld [vmem:[#allocation9] sm:$0xff] }
 0xbca   :  { %1159 = vrcp.f32 %v561_v24 }
 0xbd7   :  { %v1160_v25 = vpop.eup %1159 }
 0xbd8   :  { %v565_v28 = vmul.f32 %v1160_v25, %v473_v12 }
 0xc38   :  { %v568_v26 = vpop.permute.xlu1 %567 }
 0xc39   :  { %v570_v27 = vmul.f32 %v1160_v25, %v568_v26 }
 0xc3b   :  { %572 = vrot.lane.b32.xlu0 %v570_v27, %s1283_s2 }
 0xcad   :  { %v573_v29 = vpop.permute.xlu0 %572 }
 0xcae   :  { %v575_v30 = vadd.f32 %v573_v29, %v565_v28 }
 0xcb0   :  { %1161 = vtanh.f32 %v575_v30 }
 0xcbd   :  { %v1162_v31 = vpop.eup %1161 }
 0xcbe   :  { %578 = vrot.lane.b32.xlu1 %v1162_v31, %s1277_s25 }
 0xd30   :  { %v579_v32 = vpop.permute.xlu1 %578 }
 0xd31   :  { %v581_v33 = vmul.f32 %v1160_v25, %v579_v32 }
 0xd33   :  { %585 = vrot.lane.b32.xlu0 %v581_v33, %s1284_s7 }
 0xda5   :  { %v586_v34 = vpop.permute.xlu0 %585 }
 0xda6   :  { %1086 = vmatmul.mubr.msk.f32.vlgmr.msra.gmra.mxu1 %vm71_vm2, %v586_v34 }
 0xda7   :  { %1096 = vmatpush3.msra.mxu1 %v1333_v1  ;;  %1099 = vmatprep.mubr.msk.f32.mxu1 %vm1281_vm1, %v1280_v0 }
 0xda8   :  { %1097 = vmatprep.subr.mxu1 %v1280_v0 }
 0xda9   :  { %1098 = vmatpush3.msra.mxu1 %v1335_v2 }
 0xe66   :  { %v655_v36 = vpop.f32.mrf.mxu1 }
 0xe67   :  { %v659_v37 = vadd.f32 %v655_v36, %v583_v35 }
 0xe68   :  { %v1087_v38 = vpop.f32.mrf.mxu1 }
 0xe69   :  { %1163 = vtanh.f32 %v659_v37  ;;  %v1012_v40 = vmul.f32 -1.442695, %v659_v37 }
 0xe6b   :  { %1165 = vpow2.f32 %v1012_v40 }
 0xe76   :  { %v1164_v39 = vpop.eup %1163 }
 0xe77   :  { %669 = vrot.lane.b32.xlu1 %v1164_v39, %s1282_s0 }
 0xe78   :  { %v1166_v41 = vpop.eup %1165 }
 0xe79   :  { %v663_v42 = vadd.f32 1.0, %v1166_v41 }
 0xe7b   :  { %1167 = vrcp.f32 %v663_v42 }
 0xe88   :  { %v1168_v1 = vpop.eup %1167 }
 0xe89   :  { %v667_v45 = vmul.f32 %v1168_v1, %v575_v30 }
 0xee9   :  { %v670_v43 = vpop.permute.xlu1 %669 }
 0xeea   :  { %v672_v44 = vmul.f32 %v1168_v1, %v670_v43 }
 0xeec   :  { %674 = vrot.lane.b32.xlu0 %v672_v44, %s1283_s2 }
 0xf5e   :  { %v675_v2 = vpop.permute.xlu0 %674 }
 0xf5f   :  { %v677_v46 = vadd.f32 %v675_v2, %v667_v45 }
 0xf61   :  { %1169 = vtanh.f32 %v677_v46 }
 0xf6e   :  { %v1170_v47 = vpop.eup %1169 }
 0xf6f   :  { %680 = vrot.lane.b32.xlu1 %v1170_v47, %s1277_s25 }
 0xfe1   :  { %v681_v48 = vpop.permute.xlu1 %680 }
 0xfe2   :  { %v683_v49 = vmul.f32 %v1168_v1, %v681_v48 }
 0xfe4   :  { %687 = vrot.lane.b32.xlu0 %v683_v49, %s1284_s7 }
0x1056   :  { %v688_v50 = vpop.permute.xlu0 %687 }
0x1057   :  { %1093 = vmatmul.mubr.msk.f32.vlgmr.msra.gmra.mxu0 %vm71_vm2, %v688_v50 }
0x1058   :  { %1106 = vmatprep.mubr.msk.f32.mxu0 %vm1281_vm1, %v1280_v0  ;;  %1103 = vmatpush3.msra.mxu0 %v903_v22 }
0x1059   :  { %1104 = vmatprep.subr.mxu0 %v1280_v0  ;;  %v1017_v0 = vld [vmem:[%s1436_s3] ss:$0 sm:$0xff] }
0x105a   :  { %1105 = vmatpush3.msra.mxu0 %v902_v23 }
0x1117   :  { %v757_v52 = vpop.f32.mrf.mxu0 }
0x1118   :  { %v761_v53 = vadd.f32 %v757_v52, %v685_v51 }
0x1119   :  { %v1094_v54 = vpop.f32.mrf.mxu0 }
0x111a   :  { %1171 = vtanh.f32 %v761_v53  ;;  %v1014_v56 = vmul.f32 -1.442695, %v761_v53 }
0x111c   :  { %1173 = vpow2.f32 %v1014_v56 }
0x1127   :  { %v1172_v55 = vpop.eup %1171 }
0x1128   :  { %771 = vrot.lane.b32.xlu1 %v1172_v55, %s1282_s0 }
0x1129   :  { %v1174_v57 = vpop.eup %1173 }
0x112a   :  { %v765_v58 = vadd.f32 1.0, %v1174_v57 }
0x112c   :  { %1175 = vrcp.f32 %v765_v58 }
0x1139   :  { %v1176_v59 = vpop.eup %1175 }
0x113a   :  { %v769_v62 = vmul.f32 %v1176_v59, %v677_v46 }
0x119a   :  { %v772_v60 = vpop.permute.xlu1 %771 }
0x119b   :  { %v774_v61 = vmul.f32 %v1176_v59, %v772_v60 }
0x119d   :  { %776 = vrot.lane.b32.xlu0 %v774_v61, %s1283_s2 }
0x120f   :  { %v777_v63 = vpop.permute.xlu0 %776 }
0x1210   :  { %v779_v3 = vadd.f32 %v777_v63, %v769_v62 }
0x1212   :  { %1177 = vtanh.f32 %v779_v3 }
0x121f   :  { %v1178_v4 = vpop.eup %1177 }
0x1220   :  { %782 = vrot.lane.b32.xlu1 %v1178_v4, %s1277_s25 }
0x1292   :  { %v783_v5 = vpop.permute.xlu1 %782 }
0x1293   :  { %v785_v6 = vmul.f32 %v1176_v59, %v783_v5 }
0x1295   :  { %789 = vrot.lane.b32.xlu0 %v785_v6, %s1284_s7 }
0x1307   :  { %v790_v7 = vpop.permute.xlu0 %789 }
0x1308   :  { %1100 = vmatmul.mubr.msk.f32.vlgmr.msra.gmra.mxu1 %vm71_vm2, %v790_v7 }
0x13c8   :  { %v859_v9 = vpop.f32.mrf.mxu1 }
0x13c9   :  { %v863_v10 = vadd.f32 %v859_v9, %v787_v8 }
0x13ca   :  { %v1101_v11 = vpop.f32.mrf.mxu1 }
0x13cb   :  { %1179 = vtanh.f32 %v863_v10  ;;  %v1016_v13 = vmul.f32 -1.442695, %v863_v10 }
0x13cd   :  { %1181 = vpow2.f32 %v1016_v13 }
0x13d8   :  { %v1180_v12 = vpop.eup %1179 }
0x13d9   :  { %873 = vrot.lane.b32.xlu1 %v1180_v12, %s1282_s0 }
0x13da   :  { %v1182_v14 = vpop.eup %1181 }
0x13db   :  { %v867_v15 = vadd.f32 1.0, %v1182_v14 }
0x13dd   :  { %1183 = vrcp.f32 %v867_v15 }
0x13ea   :  { %v1184_v16 = vpop.eup %1183 }
0x13eb   :  { %v871_v19 = vmul.f32 %v1184_v16, %v779_v3 }
0x144b   :  { %v874_v17 = vpop.permute.xlu1 %873 }
0x144c   :  { %v876_v18 = vmul.f32 %v1184_v16, %v874_v17 }
0x144e   :  { %878 = vrot.lane.b32.xlu0 %v876_v18, %s1283_s2 }
0x14c0   :  { %v879_v20 = vpop.permute.xlu0 %878 }
0x14c1   :  { %v881_v21 = vadd.f32 %v879_v20, %v871_v19 }
0x14c3   :  { %1185 = vtanh.f32 %v881_v21 }
0x14d0   :  { %v1186_v24 = vpop.eup %1185 }
0x14d1   :  { %884 = vrot.lane.b32.xlu1 %v1186_v24, %s1277_s25 }
0x14d5   :  { %895 = vrot.lane.b32.xlu1 %v881_v21, %s1285_s8 }
0x1543   :  { %v885_v25 = vpop.permute.xlu1 %884 }
0x1544   :  { %v887_v26 = vmul.f32 %v1184_v16, %v885_v25 }
0x1546   :  { %889 = vrot.lane.b32.xlu0 %v887_v26, %s1284_s7 }
0x1547   :  { %v896_v27 = vpop.permute.xlu1 %895 }
0x1548   :  { %898 = vst.msk [vmem:[#allocation3] sm:$0x3] %vm63_vm0, %v896_v27 }
0x15b8   :  { %v890_v28 = vpop.permute.xlu0 %889 }
0x15b9   :  { %893 = vst.msk [vmem:[#allocation2] sm:$0x3] %vm63_vm0, %v890_v28  ;;  %1107 = vmatmul.mubr.msk.f32.vlgmr.msra.gmra.mxu0 %vm71_vm2, %v890_v28 }
0x1679   :  { %v979_v29 = vpop.f32.mrf.mxu0 }
0x167a   :  { %v980_v30 = vadd.f32 %v1017_v0, %v979_v29 }
0x167b   :  { %v1108_v31 = vpop.f32.mrf.mxu0 }
0x167c   :  { %984 = vst.msk [vmem:[#allocation10] sm:$0x3] %vm983_vm3, %v980_v30 }
0x167d   :  { %1258 = shalt.err (!%p1255_p5)
}
0x167e   :  { %994 = dma.vmem_to_hbm [thread:$0]  %s992_s12, 32, %s1437_s4, [#allocation6]  }
0x167f   :  { %1271 = dma.done.wait [#allocation6], 32  }
0x1680   :  { %1272 = vsyncadd [#allocation6], 4294967264 }
0x1681   :  { %998 = vsyncpa [#allocation5], 1 }
0x1682   :  { %999 = vsyncpa [#allocation8], 1 }
0x1683   :  { %1000 = vsyncpa [#allocation6], 1 }

</bundles_post_ra>
